<compile_context>
chip_gen: v7x
topology: tpu7x:2x2x1
jax: 0.10.0
libtpu: 0.0.40
codegen_flags: <defaults>
</compile_context>

<pallas_src>
import jax
import jax.numpy as jnp
from jax import lax
from jax.experimental import pallas as pl
from jax.experimental.pallas import tpu as pltpu

MARGIN = 5.0  # default margin in BatchHardTripletLoss.__init__


def _embed_kernel(x_ref, w_ref, emb_ref, sq_ref):
    # bf16 operands at the MXU's native rate; f32 accumulation.
    emb = jnp.dot(x_ref[...], w_ref[...], preferred_element_type=jnp.float32)
    # Row squared norms from the f32 result, BEFORE the bf16 downcast.
    sq_ref[...] = jnp.sum(emb * emb, axis=1, keepdims=True)
    emb_ref[...] = emb.astype(emb_ref.dtype)  # bf16 writeback


def _triplet_kernel(lbl_a_ref, lbl_all_ref, sq_a_ref, sq_all_ref,
                    emb_ref, loss_ref):
    tb = lbl_a_ref.shape[0]
    b = lbl_all_ref.shape[1]
    row_start = pl.multiple_of(pl.program_id(0) * tb, tb)

    # Row block = free static-size slice of the resident embeddings (no
    # separate (TB, D) HBM stream, no double-buffered duplicate in VMEM).
    emb_rows = emb_ref[pl.ds(row_start, tb), :]                      # (TB, D) bf16

    # Gram slice: contract last dims of both operands -> no (D, B) transpose
    # is materialized ahead of the MXU push; bf16 in, f32 out.
    dot = lax.dot_general(
        emb_rows, emb_ref[...],
        dimension_numbers=(((1,), (1,)), ((), ())),
        preferred_element_type=jnp.float32)                          # (TB, B)

    # SQUARED distances only.  Mining happens on d^2 (sqrt is monotone); the
    # sqrt is applied to the two (TB, 1) winners at the end.
    d2 = jnp.maximum(sq_a_ref[...] - 2.0 * dot + sq_all_ref[...], 0.0)

    labels_equal = lbl_a_ref[...] == lbl_all_ref[...]                # (TB, B)

    # Exclude the diagonal from the positive mask: bf16 Gram vs f32 norms can
    # leave a tiny positive residue on the diagonal, and the reference keeps
    # hardest_positive == 0 for rows whose only "positive" is the anchor.
    # One column iota + one broadcast compare, folded into the positive select
    # (cheaper than rewriting the whole d2 slab).
    col_ids = lax.broadcasted_iota(jnp.int32, (tb, b), 1)
    row_ids = lax.broadcasted_iota(jnp.int32, (tb, 1), 0) + row_start
    pos_mask = labels_equal & (col_ids != row_ids)

    hardest_pos2 = jnp.max(jnp.where(pos_mask, d2, 0.0),
                           axis=1, keepdims=True)                    # (TB, 1)

    # Hardest negative: same-label entries are REPLACED by the row max (no
    # "+ row_max" add).  Identical result: the sentinel never beats a real
    # negative, and all-same-label rows still degenerate to row_max.
    row_max2 = jnp.max(d2, axis=1, keepdims=True)
    hardest_neg2 = jnp.min(jnp.where(labels_equal, row_max2, d2),
                           axis=1, keepdims=True)                    # (TB, 1)

    tl = jnp.sqrt(hardest_pos2) - jnp.sqrt(hardest_neg2) + MARGIN
    loss_ref[...] = jnp.maximum(tl, 0.0)


def _pick_row_tile(B, block_rows):
    if block_rows is not None:
        tb = block_rows
    else:
        kind = ""
        try:
            kind = jax.devices()[0].device_kind.lower()
        except Exception:
            pass
        # v6e/v7x MXU is 256 wide on the M dim -> TB=256; v5e MXU is 128 wide
        # and has a smaller scoped-VMEM default -> TB=128.
        tb = min(B, 128 if "v5" in kind else 256)
        # v7x megacore: keep >= 2 row-block grid steps so both TCs get work.
        if "7" in kind and tb == B and B >= 16 and (B // 2) % 8 == 0:
            tb = B // 2
    if B % tb != 0:
        tb = B  # fall back to a single full-height block
    return tb


def batch_hard_triplet_loss(x, w, labels, *, block_rows=None):
    """x: (B, H) pooled features, w: (H, D) projection, labels: (B,) int.
    Returns scalar f32 batch-hard triplet loss (margin=5)."""
    B, H = x.shape
    D = w.shape[1]
    TB = _pick_row_tile(B, block_rows)
    assert B % TB == 0
    grid = (B // TB,)

    # bf16 operands halve HBM traffic and run at the MXU's native rate on all
    # three generations; all accumulation stays in f32 inside the kernels.
    x_lp = x.astype(jnp.bfloat16)
    w_lp = w.astype(jnp.bfloat16)

    # ---- kernel 1: projection + row squared norms (tiled over row blocks) ----
    emb, sq = pl.pallas_call(
        _embed_kernel,
        out_shape=(jax.ShapeDtypeStruct((B, D), jnp.bfloat16),
                   jax.ShapeDtypeStruct((B, 1), jnp.float32)),
        grid=grid,
        in_specs=[pl.BlockSpec((TB, H), lambda i: (i, 0)),
                  pl.BlockSpec((H, D), lambda i: (0, 0))],
        out_specs=(pl.BlockSpec((TB, D), lambda i: (i, 0)),
                   pl.BlockSpec((TB, 1), lambda i: (i, 0))),
        compiler_params=pltpu.CompilerParams(
            dimension_semantics=("parallel",)),
    )(x_lp, w_lp)

    labels_anchor = labels.reshape(B, 1).astype(jnp.int32)
    labels_all = labels.reshape(1, B).astype(jnp.int32)
    sq_all = sq.reshape(1, B)

    # Explicit VMEM budget for kernel 2: double-buffered resident bf16 emb +
    # a handful of live f32 (TB, B) slabs + the small row/column vectors.
    est = (2 * B * D * 2          # emb (bf16), double buffered
           + 8 * TB * B * 4       # live f32 (TB, B) slabs (d2, masks, iota)
           + 2 * 2 * B * 4 * 2    # label / sq-norm full-row vectors (dbl buf)
           + 6 * TB * 4 * 2)      # per-row-block vectors / output
    vmem_limit = int(min(max(est, 4 << 20), 64 << 20))

    # ---- kernel 2: per-row-block batch-hard mining on squared distances ----
    loss_rows = pl.pallas_call(
        _triplet_kernel,
        out_shape=jax.ShapeDtypeStruct((B, 1), jnp.float32),
        grid=grid,
        in_specs=[pl.BlockSpec((TB, 1), lambda i: (i, 0)),   # anchor labels
                  pl.BlockSpec((1, B), lambda i: (0, 0)),    # all labels
                  pl.BlockSpec((TB, 1), lambda i: (i, 0)),   # anchor sq norms
                  pl.BlockSpec((1, B), lambda i: (0, 0)),    # all sq norms
                  pl.BlockSpec((B, D), lambda i: (0, 0))],   # resident bf16 emb
        out_specs=pl.BlockSpec((TB, 1), lambda i: (i, 0)),
        compiler_params=pltpu.CompilerParams(
            dimension_semantics=("parallel",),
            vmem_limit_bytes=vmem_limit),
        cost_estimate=pl.CostEstimate(
            flops=2 * B * B * D,
            transcendentals=2 * B,
            bytes_accessed=(B // TB) * (B * D * 2) + B * D * 2 + 4 * B * 4),
    )(labels_anchor, labels_all, sq, sq_all, emb)

    # Mean over anchors (sum-then-scale composes with the parallel grid).
    return jnp.sum(loss_rows) / B


def _reference_loss(x, w, labels):
    """Pure-JAX f32 reference mirroring the PyTorch BatchHardTripletLoss."""
    emb = x.astype(jnp.float32) @ w.astype(jnp.float32)
    dot = emb @ emb.T
    sq = jnp.diag(dot)
    d = sq[None, :] - 2.0 * dot + sq[:, None]
    d = jnp.maximum(d, 0.0)
    zmask = (d == 0.0).astype(jnp.float32)
    d = (1.0 - zmask) * jnp.sqrt(d + zmask * 1e-16)
    eye = jnp.eye(labels.shape[0], dtype=bool)
    leq = labels[None, :] == labels[:, None]
    mask_ap = (leq & ~eye).astype(jnp.float32)
    mask_an = (~leq).astype(jnp.float32)
    hp = jnp.max(mask_ap * d, axis=1, keepdims=True)
    mx = jnp.max(d, axis=1, keepdims=True)
    hn = jnp.min(d + mx * (1.0 - mask_an), axis=1, keepdims=True)
    return jnp.mean(jnp.maximum(hp - hn + MARGIN, 0.0))


if __name__ == "__main__":
    # Small but vreg/MXU-friendly shapes: B multiple of 8, D lane-aligned.
    B, H, D = 8, 32, 128
    key = jax.random.PRNGKey(0)
    kx, kw, kl = jax.random.split(key, 3)

    x = jax.random.normal(kx, (B, H), dtype=jnp.float32)
    # Deterministic "embedder" weights (stand-in for the SentenceTransformer).
    w = jax.random.normal(kw, (H, D), dtype=jnp.float32) * 0.1
    labels = jax.random.randint(kl, (B,), 0, 3, dtype=jnp.int32)

    loss = batch_hard_triplet_loss(x, w, labels)
    jax.block_until_ready(loss)

    ref = _reference_loss(x, w, labels)
    # bf16 embeddings vs the f32 reference: tolerance loosened per review.
    assert jnp.allclose(loss, ref, rtol=2e-2, atol=2e-2), (loss, ref)

    print("KERNEL_OK")
</pallas_src>

<mosaic_0001>
module attributes {stable_mosaic.version = 11 : i64} {
  func.func @_embed_kernel(%arg0: i32, %arg1: memref<8x32xbf16, #tpu.memory_space<vmem>>, %arg2: memref<32x128xbf16, #tpu.memory_space<vmem>>, %arg3: memref<8x128xbf16, #tpu.memory_space<vmem>>, %arg4: memref<8x1xf32, #tpu.memory_space<vmem>>) attributes {dimension_semantics = [#tpu.dimension_semantics<parallel>], iteration_bounds = array<i64: 1>, scalar_prefetch = 0 : i64, scratch_operands = 0 : i64, tpu.core_type = #tpu.core_type<tc>, window_params = [{transform_indices = @transform_0, window_bounds = array<i64: 8, 32>}, {pipeline_mode = #tpu.pipeline_mode<synchronous>, transform_indices = @transform_1, window_bounds = array<i64: 32, 128>}, {transform_indices = @transform_2, window_bounds = array<i64: 8, 128>}, {transform_indices = @transform_3, window_bounds = array<i64: 8, 1>}]} {
    %c0 = arith.constant 0 : index
    %c0_0 = arith.constant 0 : index
    %0 = vector.load %arg1[%c0, %c0_0] : memref<8x32xbf16, #tpu.memory_space<vmem>>, vector<8x32xbf16>
    %c0_1 = arith.constant 0 : index
    %c0_2 = arith.constant 0 : index
    %1 = vector.load %arg2[%c0_1, %c0_2] : memref<32x128xbf16, #tpu.memory_space<vmem>>, vector<32x128xbf16>
    %cst = arith.constant dense<0.000000e+00> : vector<8x128xf32>
    %2 = tpu.matmul %0, %1, %cst {dimension_numbers = #tpu.dot_dimension_numbers<[1], [0], [0], [1], [0, 0, 1, 1], [], []>} : vector<8x32xbf16>, vector<32x128xbf16>, vector<8x128xf32> -> vector<8x128xf32>
    %3 = arith.mulf %2, %2 : vector<8x128xf32>
    %cst_3 = arith.constant dense<0.000000e+00> : vector<8xf32>
    %4 = vector.multi_reduction <add>, %3, %cst_3 [1] : vector<8x128xf32> to vector<8xf32>
    %5 = vector.shape_cast %4 : vector<8xf32> to vector<8x1xf32>
    %c0_4 = arith.constant 0 : index
    %c0_5 = arith.constant 0 : index
    %6 = vector.load %arg4[%c0_4, %c0_5] : memref<8x1xf32, #tpu.memory_space<vmem>>, vector<8x1xf32>
    tpu.vector_store %arg4[%c0_4, %c0_5], %5 {strides = array<i32>} : memref<8x1xf32, #tpu.memory_space<vmem>>, vector<8x1xf32>,
    %7 = arith.truncf %2 : vector<8x128xf32> to vector<8x128xbf16>
    %c0_6 = arith.constant 0 : index
    %c0_7 = arith.constant 0 : index
    %8 = vector.load %arg3[%c0_6, %c0_7] : memref<8x128xbf16, #tpu.memory_space<vmem>>, vector<8x128xbf16>
    tpu.vector_store %arg3[%c0_6, %c0_7], %7 {strides = array<i32>} : memref<8x128xbf16, #tpu.memory_space<vmem>>, vector<8x128xbf16>,
    return
  }
  func.func @transform_0(%arg0: i32) -> (i32, i32) {
    %c0_i32 = arith.constant 0 : i32
    %c0_i32_0 = arith.constant 0 : i32
    return %arg0, %c0_i32 : i32, i32
  }
  func.func @transform_1(%arg0: i32) -> (i32, i32) {
    %c0_i32 = arith.constant 0 : i32
    %c0_i32_0 = arith.constant 0 : i32
    %c0_i32_1 = arith.constant 0 : i32
    return %c0_i32, %c0_i32_0 : i32, i32
  }
  func.func @transform_2(%arg0: i32) -> (i32, i32) {
    %c0_i32 = arith.constant 0 : i32
    %c0_i32_0 = arith.constant 0 : i32
    return %arg0, %c0_i32 : i32, i32
  }
  func.func @transform_3(%arg0: i32) -> (i32, i32) {
    %c0_i32 = arith.constant 0 : i32
    %c0_i32_0 = arith.constant 0 : i32
    return %arg0, %c0_i32 : i32, i32
  }
}

</mosaic_0001>

<bundles_post_ra>
// kernel: tpu_custom_call.1
= control target key start
LH: loop header
LB: loop body
LE: loop exit
PB: predicated region body
PF: predicated region fallthrough
CT: control target
= control target key end

     0   :  { %9 = vsyncpa [#allocation3], 0  ;;  %s297_s0 = inlined_call_operand.hbm [shape: bf16[8,32], index: 0, kind: input, shape index: {}]   ;;  %s298_s1 = inlined_call_operand.hbm [shape: bf16[32,128], index: 1, kind: input, shape index: {}]   ;;  %s299_s2 = inlined_call_operand.hbm [shape: bf16[8,128], index: 2, kind: output, shape index: {0}]   ;;  %s300_s3 = inlined_call_operand.vmem [shape: f32[8,1], index: 3, kind: output, shape index: {1}]  }
   0x1   :  { %10 = vsyncpa [#allocation6], 0 }
   0x2   :  { %11 = vsyncpa [#allocation4], 0  ;;  %s224_s12 = smov [#allocation2]   ;;  %s225_s14 = smov [#allocation5]  }
   0x3   :  { %s18_s13 = sshll.u32 %s224_s12, 4  ;;  %s27_s15 = sshll.u32 %s225_s14, 4  ;;  %s19_s13 = int_to_ptr.vmem [resolvable:$true] %s18_s13  ;;  %s251_s15 = int_to_ptr.vmem [resolvable:$true] %s27_s15 }
   0x4   :  { %s152_s18 = scalar_lea.hbm %s297_s0, 64 }
   0x5   :  { %p153_p0 = scmp.ne.s32.totalorder %s297_s0, %s152_s18  ;;  %p156_p1 = scmp.lt.u32.totalorder %s152_s18, %s297_s0 }
   0x7   :  { %p158_p2 = pnand %p156_p1, %p153_p0 }
   0x9   :  { %161 = shalt.err (!%p158_p2)
}
   0xa   :  { %s162_s23 = scalar_lea.vmem %s19_s13, 64  ;;  %p167_p4 = scmp.lt.s32.totalorder %s19_s13, %s19_s13 }
   0xb   :  { %p163_p3 = scmp.ne.s32.totalorder %s19_s13, %s162_s23  ;;  %p168_p5 = scmp.lt.s32.totalorder %s162_s23, %s162_s23 }
   0xd   :  { %p169_p6 = por %p168_p5, %p167_p4 }
   0xf   :  { %p170_p7 = pnand %p169_p6, %p163_p3 }
  0x11   :  { %173 = shalt.err (!%p170_p7)
}
  0x12   :  { %21 = dma.hbm_to_vmem [thread:$0]  %s297_s0, 64, %s19_s13, [#allocation3]  }
  0x13   :  { %s174_s28 = scalar_lea.hbm %s298_s1, 256 }
  0x14   :  { %p175_p8 = scmp.ne.s32.totalorder %s298_s1, %s174_s28  ;;  %p178_p9 = scmp.lt.u32.totalorder %s174_s28, %s298_s1 }
  0x16   :  { %p180_p10 = pnand %p178_p9, %p175_p8 }
  0x18   :  { %183 = shalt.err (!%p180_p10)
}
  0x19   :  { %s184_s6 = scalar_lea.vmem %s251_s15, 256  ;;  %p189_p12 = scmp.lt.s32.totalorder %s251_s15, %s251_s15 }
  0x1a   :  { %p185_p11 = scmp.ne.s32.totalorder %s251_s15, %s184_s6  ;;  %p190_p13 = scmp.lt.s32.totalorder %s184_s6, %s184_s6 }
  0x1c   :  { %p191_p0 = por %p190_p13, %p189_p12 }
  0x1e   :  { %p192_p1 = pnand %p191_p0, %p185_p11 }
  0x20   :  { %195 = shalt.err (!%p192_p1)
}
  0x21   :  { %s226_s0 = smov 64   ;;  %s227_s7 = smov 4  }
  0x22   :  { %33 = dma.hbm_to_vmem [thread:$0]  %s298_s1, 256, %s251_s15, [#allocation6], %s226_s0, %s226_s0, %s227_s7  }
  0x23   :  { %218 = dma.done.wait [#allocation3], 64  }
  0x24   :  { %219 = vsyncadd [#allocation3], 4294967232 }
  0x25   :  { %220 = dma.done.wait [#allocation6], 256  }
  0x26   :  { %221 = vsyncadd [#allocation6], 4294967040  ;;  %v228_v0 = vmov 0.0   ;;  %vm229_vm0 = vmmov 0   ;;  %v150_v1 = vld [vmem:[#allocation5] sm:$0xff]   ;;  %v151_v2 = vld [vmem:[#allocation5 + $0x8] sm:$0xff]  }
  0x27   :  { %135 = vmatprep.subr.bf16.mxu0 %v228_v0  ;;  %139 = vmatprep.mubr.msk.bf16.mxu0 %vm229_vm0, %v228_v0  ;;  %v41_v3 = vld [vmem:[#allocation2] sm:$0xf]  ;;  %vm58_vm1 = vcmask 261120   ;;  %s230_s1 = smov [#allocation7]  }
  0x28   :  { %136 = vmatpush3.bf16.msra.mxu0 %v150_v1  ;;  %s115_s10 = sshll.u32 %s230_s1, 4  ;;  %s116_s10 = int_to_ptr.vmem [resolvable:$true] %s115_s10 }
  0x29   :  { %137 = vmatprep.subr.bf16.mxu0 %v228_v0  ;;  %s196_s11 = scalar_lea.vmem %s116_s10, 64  ;;  %p201_p3 = scmp.lt.s32.totalorder %s116_s10, %s116_s10 }
  0x2a   :  { %p197_p2 = scmp.ne.s32.totalorder %s116_s10, %s196_s11  ;;  %p202_p4 = scmp.lt.s32.totalorder %s196_s11, %s196_s11 }
  0x2c   :  { %138 = vmatpush3.bf16.msra.mxu0 %v151_v2  ;;  %p203_p5 = por %p202_p4, %p201_p3 }
  0x2e   :  { %p204_p6 = pnand %p203_p5, %p197_p2 }
  0x2f   :  { %140 = vmatmul.mubr.msk.bf16.vlgmr.msra.gmra.mrb[0].mxu0 %vm58_vm1, %v41_v3 }
 0x102   :  { %v96_v4 = vpop.f32.mrb[0].mxu0 }
 0x103   :  { %v107_v5 = vpack.c.bf16 %v96_v4, %v96_v4  ;;  %v141_v6 = vpop.f32.mrb[1].mxu0  ;;  %v102_v7 = vmul.f32 %v96_v4, %v96_v4 }
 0x104   :  { %v99_v8 = vpop.f32.mrb[2].mxu0 }
 0x105   :  { %108 = vst [vmem:[#allocation7] sm:$0xf] %v107_v5  ;;  %v142_v9 = vpop.f32.mrb[3].mxu0  ;;  %103 = vadd.xlane.f32.xlu0 %v102_v7 }
 0x106   :  { %207 = shalt.err (!%p204_p6)
}
 0x107   :  { %s208_s14 = scalar_lea.hbm %s299_s2, 64 }
 0x108   :  { %p209_p7 = scmp.ne.s32.totalorder %s299_s2, %s208_s14  ;;  %p212_p8 = scmp.lt.u32.totalorder %s208_s14, %s299_s2 }
 0x10a   :  { %p214_p9 = pnand %p212_p8, %p209_p7 }
 0x10c   :  { %217 = shalt.err (!%p214_p9)
}
 0x10d   :  { %118 = dma.vmem_to_hbm [thread:$0]  %s116_s10, 64, %s299_s2, [#allocation4]   ;;  %vm105_vm2 = vcmask 7168  }
 0x192   :  { %v104_v10 = vpop.xlane.xlu0 %103 }
 0x193   :  { %106 = vst.msk [vmem:[%s300_s3] sm:$0xff] %vm105_vm2, %v104_v10 }
 0x194   :  { %222 = dma.done.wait [#allocation4], 64  }
 0x195   :  { %223 = vsyncadd [#allocation4], 4294967232 }
 0x196   :  { %126 = vsyncpa [#allocation3], 1 }
 0x197   :  { %127 = vsyncpa [#allocation6], 1 }
 0x198   :  { %128 = vsyncpa [#allocation4], 1 }

</bundles_post_ra>
